<compile_context>
chip_gen: v7x
topology: tpu7x:2x2x1
jax: 0.10.0
libtpu: 0.0.40
codegen_flags: <defaults>
</compile_context>

<pallas_src>
import functools

import jax
import jax.numpy as jnp
from jax.experimental import pallas as pl
from jax.experimental.pallas import tpu as pltpu


def _tpu_vmem_budget():
    """Returns (block_vmem_budget_bytes, vmem_limit_bytes, two_tensorcores).

    128 MiB-VMEM single-TC parts (v5e / v6e): large blocks, high fallback
    threshold.  64 MiB-VMEM v7x (2 TCs) or unknown: conservative sizing and
    prefer an even grid so the "parallel" axis shards across both cores.
    """
    cap = None
    try:
        cap = int(pltpu.get_tpu_info().vmem_capacity_bytes)
    except Exception:
        cap = None
    if cap is not None and cap >= 96 * 1024 * 1024:
        return 64 * 1024 * 1024, 96 * 1024 * 1024, False
    return 24 * 1024 * 1024, 48 * 1024 * 1024, True


def _choose_batch(nc, per_plane_step_bytes, budget, two_cores):
    """Largest divisor of nc fitting the budget (prefer even/>=2 grid on v7x)."""
    b_fit = max(1, budget // per_plane_step_bytes)
    divisors = [d for d in range(1, min(nc, b_fit) + 1) if nc % d == 0]
    if not divisors:
        return 1
    if two_cores and nc >= 2:
        even_g = [d for d in divisors if (nc // d) % 2 == 0]
        if even_g:
            return max(even_g)
        multi_g = [d for d in divisors if nc // d >= 2]
        if multi_g:
            return max(multi_g)
    return max(divisors)


def _periodic_pad_kernel(x_ref, o_ref, *, pad):
    # x_ref block: (B, H, W); o_ref block: (B, H + 2*pad, W + 2*pad).
    p = pad
    _, H, W = x_ref.shape

    def wrapped_band(rows):
        # rows: (B, rh, W) -> (B, rh, W + 2p), circular wrap along the lane axis.
        return jnp.concatenate([rows[..., W - p:], rows, rows[..., :p]], axis=-1)

    # Three contiguous full-width band stores (start at lane 0, full Wo width):
    # no narrow column writes, no corner writes, no lane-offset center store.
    # Each band reads its rows directly from an x_ref sub-view at the store
    # site, keeping live ranges short (stream vld -> XLU concat -> vst).
    o_ref[:, p:p + H, :] = wrapped_band(x_ref[...])            # center rows
    o_ref[:, :p, :] = wrapped_band(x_ref[:, H - p:, :])        # top band (from bottom rows)
    o_ref[:, p + H:, :] = wrapped_band(x_ref[:, :p, :])        # bottom band (from top rows)


def periodic_pad2d(x, pad):
    """Equivalent of F.pad(x, (pad,)*4, mode='circular') for NCHW input."""
    N, C, H, W = x.shape
    if pad == 0:
        return x
    p = pad
    assert p <= H and p <= W, "circular pad must not exceed spatial size"
    Ho, Wo = H + 2 * p, W + 2 * p
    NC = N * C
    itemsize = jnp.dtype(x.dtype).itemsize

    block_budget, vmem_limit, two_cores = _tpu_vmem_budget()

    # Per-plane VMEM per grid step: double-buffered input + output blocks plus
    # one output-sized temporary for the lane-concat band assembly.
    per_plane_step_bytes = (2 * H * W + 3 * Ho * Wo) * itemsize
    io_bytes_per_plane = (H * W + Ho * Wo) * itemsize

    if per_plane_step_bytes > block_budget:
        # TODO(synk): H-tiled Pallas path (output row tiles + wrap-row halo
        # inputs) for planes too large to hold fully in VMEM; XLA wrap-pad for now.
        return jnp.pad(x, ((0, 0), (0, 0), (p, p), (p, p)), mode="wrap")

    B = _choose_batch(NC, per_plane_step_bytes, block_budget, two_cores)
    G = NC // B  # B divides NC exactly -> no wrapper-side pad/slice passes.

    xf = x.reshape(NC, H, W)

    out = pl.pallas_call(
        functools.partial(_periodic_pad_kernel, pad=p),
        out_shape=jax.ShapeDtypeStruct((NC, Ho, Wo), x.dtype),
        grid_spec=pltpu.PrefetchScalarGridSpec(
            num_scalar_prefetch=0,
            grid=(G,),
            # Last two block dims equal the full array dims -> (8,128) rule met.
            in_specs=[pl.BlockSpec((B, H, W), lambda i: (i, 0, 0))],
            out_specs=pl.BlockSpec((B, Ho, Wo), lambda i: (i, 0, 0)),
        ),
        compiler_params=pltpu.CompilerParams(
            dimension_semantics=("parallel",),
            vmem_limit_bytes=vmem_limit,
        ),
        cost_estimate=pl.CostEstimate(
            flops=0,
            transcendentals=0,
            bytes_accessed=NC * io_bytes_per_plane,
        ),
    )(xf)

    return out.reshape(N, C, Ho, Wo)


if __name__ == "__main__":
    key = jax.random.PRNGKey(0)

    # NCHW shape implied by the module's forward.
    N, C, H, W = 2, 4, 16, 16
    pad = 2
    x = jax.random.normal(key, (N, C, H, W), dtype=jnp.float32)

    y = jax.block_until_ready(periodic_pad2d(x, pad))
    ref = jnp.pad(x, ((0, 0), (0, 0), (pad, pad), (pad, pad)), mode="wrap")
    assert y.shape == (N, C, H + 2 * pad, W + 2 * pad), y.shape
    assert y.dtype == x.dtype
    assert jnp.allclose(y, ref), "mismatch vs circular-pad reference"

    # Rectangular plane with NC prime (exercises the divisor-based batching and
    # the multi-step grid path) and a different pad.
    N2, C2, H2, W2, pad2 = 1, 3, 24, 40, 3
    x2 = jax.random.normal(jax.random.PRNGKey(0), (N2, C2, H2, W2),
                           dtype=jnp.float32)
    y2 = jax.block_until_ready(periodic_pad2d(x2, pad2))
    ref2 = jnp.pad(x2, ((0, 0), (0, 0), (pad2, pad2), (pad2, pad2)),
                   mode="wrap")
    assert y2.shape == (N2, C2, H2 + 2 * pad2, W2 + 2 * pad2), y2.shape
    assert jnp.allclose(y2, ref2), "mismatch on second test"

    print("KERNEL_OK")
</pallas_src>

<mosaic_0001>
module attributes {stable_mosaic.version = 11 : i64} {
  func.func @_periodic_pad_kernel(%arg0: i32, %arg1: memref<4x16x16xf32, #tpu.memory_space<vmem>>, %arg2: memref<4x20x20xf32, #tpu.memory_space<vmem>>) attributes {dimension_semantics = [#tpu.dimension_semantics<parallel>], iteration_bounds = array<i64: 2>, scalar_prefetch = 0 : i64, scratch_operands = 0 : i64, tpu.core_type = #tpu.core_type<tc>, window_params = [{transform_indices = @transform_0, window_bounds = array<i64: 4, 16, 16>}, {transform_indices = @transform_1, window_bounds = array<i64: 4, 20, 20>}]} {
    %c0 = arith.constant 0 : index
    %c0_0 = arith.constant 0 : index
    %c0_1 = arith.constant 0 : index
    %0 = vector.load %arg1[%c0, %c0_0, %c0_1] : memref<4x16x16xf32, #tpu.memory_space<vmem>>, vector<4x16x16xf32>
    %1 = vector.extract_strided_slice %0 {offsets = [0, 0, 14], sizes = [4, 16, 2], strides = [1, 1, 1]} : vector<4x16x16xf32> to vector<4x16x2xf32>
    %2 = vector.extract_strided_slice %0 {offsets = [0, 0, 0], sizes = [4, 16, 2], strides = [1, 1, 1]} : vector<4x16x16xf32> to vector<4x16x2xf32>
    %3 = tpu.concatenate %1, %0, %2 in 2 : vector<4x16x2xf32>, vector<4x16x16xf32>, vector<4x16x2xf32> -> vector<4x16x20xf32>
    %c0_2 = arith.constant 0 : index
    %c2 = arith.constant 2 : index
    %c0_3 = arith.constant 0 : index
    %4 = vector.load %arg2[%c0_2, %c2, %c0_3] : memref<4x20x20xf32, #tpu.memory_space<vmem>>, vector<4x16x20xf32>
    tpu.vector_store %arg2[%c0_2, %c2, %c0_3], %3 {strides = array<i32>} : memref<4x20x20xf32, #tpu.memory_space<vmem>>, vector<4x16x20xf32>,
    %c0_4 = arith.constant 0 : index
    %c14 = arith.constant 14 : index
    %c0_5 = arith.constant 0 : index
    %5 = vector.load %arg1[%c0_4, %c14, %c0_5] : memref<4x16x16xf32, #tpu.memory_space<vmem>>, vector<4x2x16xf32>
    %6 = vector.extract_strided_slice %5 {offsets = [0, 0, 14], sizes = [4, 2, 2], strides = [1, 1, 1]} : vector<4x2x16xf32> to vector<4x2x2xf32>
    %7 = vector.extract_strided_slice %5 {offsets = [0, 0, 0], sizes = [4, 2, 2], strides = [1, 1, 1]} : vector<4x2x16xf32> to vector<4x2x2xf32>
    %8 = tpu.concatenate %6, %5, %7 in 2 : vector<4x2x2xf32>, vector<4x2x16xf32>, vector<4x2x2xf32> -> vector<4x2x20xf32>
    %c0_6 = arith.constant 0 : index
    %c0_7 = arith.constant 0 : index
    %c0_8 = arith.constant 0 : index
    %9 = vector.load %arg2[%c0_6, %c0_7, %c0_8] : memref<4x20x20xf32, #tpu.memory_space<vmem>>, vector<4x2x20xf32>
    tpu.vector_store %arg2[%c0_6, %c0_7, %c0_8], %8 {strides = array<i32>} : memref<4x20x20xf32, #tpu.memory_space<vmem>>, vector<4x2x20xf32>,
    %c0_9 = arith.constant 0 : index
    %c0_10 = arith.constant 0 : index
    %c0_11 = arith.constant 0 : index
    %10 = vector.load %arg1[%c0_9, %c0_10, %c0_11] : memref<4x16x16xf32, #tpu.memory_space<vmem>>, vector<4x2x16xf32>
    %11 = vector.extract_strided_slice %10 {offsets = [0, 0, 14], sizes = [4, 2, 2], strides = [1, 1, 1]} : vector<4x2x16xf32> to vector<4x2x2xf32>
    %12 = vector.extract_strided_slice %10 {offsets = [0, 0, 0], sizes = [4, 2, 2], strides = [1, 1, 1]} : vector<4x2x16xf32> to vector<4x2x2xf32>
    %13 = tpu.concatenate %11, %10, %12 in 2 : vector<4x2x2xf32>, vector<4x2x16xf32>, vector<4x2x2xf32> -> vector<4x2x20xf32>
    %c0_12 = arith.constant 0 : index
    %c18 = arith.constant 18 : index
    %c0_13 = arith.constant 0 : index
    %14 = vector.load %arg2[%c0_12, %c18, %c0_13] : memref<4x20x20xf32, #tpu.memory_space<vmem>>, vector<4x2x20xf32>
    tpu.vector_store %arg2[%c0_12, %c18, %c0_13], %13 {strides = array<i32>} : memref<4x20x20xf32, #tpu.memory_space<vmem>>, vector<4x2x20xf32>,
    return
  }
  func.func @transform_0(%arg0: i32) -> (i32, i32, i32) {
    %c0_i32 = arith.constant 0 : i32
    %c0_i32_0 = arith.constant 0 : i32
    %c0_i32_1 = arith.constant 0 : i32
    return %arg0, %c0_i32, %c0_i32_0 : i32, i32, i32
  }
  func.func @transform_1(%arg0: i32) -> (i32, i32, i32) {
    %c0_i32 = arith.constant 0 : i32
    %c0_i32_0 = arith.constant 0 : i32
    %c0_i32_1 = arith.constant 0 : i32
    return %arg0, %c0_i32, %c0_i32_0 : i32, i32, i32
  }
}

</mosaic_0001>

<bundles_post_ra>
// kernel: tpu_custom_call.1
= control target key start
LH: loop header
LB: loop body
LE: loop exit
PB: predicated region body
PF: predicated region fallthrough
CT: control target
= control target key end

     0   :  { %6 = vsyncpa [#allocation3], 0  ;;  %s839_s0 = inlined_call_operand.hbm [shape: f32[8,16,16], index: 0, kind: input, shape index: {}]   ;;  %s840_s1 = inlined_call_operand.vmem [shape: f32[8,20,20], index: 1, kind: output, shape index: {}]  }
   0x1   :  { %8 = vsyncpa [#allocation3 + $0x1], 0  ;;  %s582_s6 = smov 0   ;;  %s584_s7 = smov 0  }
   0x2   :  { %s586_s8 = smov 0   ;;  %s588_s9 = smov 0  }
   0x3 LB: > { %s439_s10 = sadd.s32 4294967295, %s564_s9   ;;  %s602_s11 = sadd.s32 1, %s564_s9   ;;  %s564_s9 = sphi %s588_s9, %s847_s9   ;;  %s560_s8 = sphi %s586_s8, %s846_s8   ;;  %s556_s7 = sphi %s584_s7, %s845_s7   ;;  %s552_s6 = sphi %s582_s6, %s844_s6  }
   0x4   : > { %s18_s12 = ssub.s32 %s564_s9, %s602_s11  ;;  %s21_s13 = sadd.s32 1, %s560_s8 }
   0x5   : > { %p19_p0 = scmp.eq.s32.totalorder %s18_s12, 0  ;;  %p28_p1 = scmp.ne.s32.totalorder %s560_s8, %s556_s7 }
   0x6   : > { %p29_p2 = scmp.eq.s32.totalorder %s564_s9, 0  ;;  %p34_p3 = scmp.ne.s32.totalorder %s556_s7, %s552_s6 }
   0x7   : > { %s612_s14 = scalar_select %p19_p0, %s560_s8, %s21_s13  }
   0x8   : > { %p30_p4 = por %p29_p2, %p28_p1  ;;  %p35_p5 = scmp.eq.s32.totalorder %s439_s10, 0 }
   0x9   : > { %p462_p6 = scmp.lt.s32.totalorder %s564_s9, 2  ;;  %s84_s16 = sand.u32 1, %s560_s8  }
   0xa   : > { %p617_p7 = por %p35_p5, %p34_p3  ;;  %s443_s17 = sshll.u32 %s84_s16, 6 }
   0xb   : > { %s454_s18 = sshll.u32 %s564_s9, 10  ;;  %s88_s22 = scalar_lea.vmem [#allocation2], %s443_s17 }
   0xc   : > { %s626_s21 = scalar_lea.hbm %s839_s0, %s454_s18  ;;  %s96_s23 = sshll.u32 %s88_s22, 4  ;;  %s628_s23 = int_to_ptr.vmem [resolvable:$true] %s96_s23 }
   0xd   : > { %p630_p8 = pnand %p462_p6, %p30_p4  ;;  %s635_s25 = scalar_lea.sflag [#allocation3], %s84_s16 }
   0xe   : > { %s500_s26 = scalar_lea.hbm %s626_s21, 1024  ;;  %s505_s29 = scalar_lea.hbm %s839_s0, 2048 }
   0xf   : > { %p501_p10 = scmp.ne.s32.totalorder %s626_s21, %s500_s26  ;;  %p502_p11 = pneg %p630_p8 }
  0x10   : > { %p506_p0 = scmp.lt.u32.totalorder %s626_s21, %s839_s0  ;;  %p507_p1 = scmp.lt.u32.totalorder %s505_s29, %s500_s26 }
  0x11   : > { %p503_p12 = pnand %p502_p11, %p501_p10  ;;  %p509_p3 = scmp.lt.u32.totalorder %s500_s26, %s626_s21 }
  0x12   : > { %p508_p2 = por %p507_p1, %p506_p0 }
  0x13   : > { %p504_p13 = pneg %p503_p12 }
  0x14   : > { %p510_p4 = por %p509_p3, %p508_p2 }
  0x16   : > { %p511_p5 = pnand %p510_p4, %p504_p13 }
  0x18   : > { %514 = shalt.err (!%p511_p5)
}
  0x19   : > { %s515_s3 = scalar_lea.vmem %s628_s23, 1024  ;;  %s566_s4 = smov [#allocation2]  }
  0x1a   : > { %p516_p6 = scmp.ne.s32.totalorder %s628_s23, %s515_s3  ;;  %s520_s5 = sshll.u32 %s566_s4, 4  ;;  %s521_s5 = int_to_ptr.vmem [resolvable:$false] %s520_s5 }
  0x1b   : > { %s522_s6 = scalar_lea.vmem %s521_s5, 2048  ;;  %p523_p9 = scmp.lt.s32.totalorder %s628_s23, %s521_s5 }
  0x1c   : > { %p518_p10 = pnand %p516_p6, %p502_p11  ;;  %p524_p0 = scmp.lt.s32.totalorder %s522_s6, %s515_s3 }
  0x1e   : > { %p519_p12 = pneg %p518_p10  ;;  %p525_p1 = por %p524_p0, %p523_p9 }
  0x20   : > { %p526_p2 = pnand %p525_p1, %p519_p12 }
  0x22   : > { %529 = shalt.err (!%p526_p2)
}
  0x23   : > { %s567_s12 = smov 128   ;;  %s568_s13 = smov 8  }
  0x24   : > { %461 = dma.hbm_to_vmem [thread:$0]  (!%p630_p8), %s626_s21, 1024, %s628_s23, %s635_s25, %s567_s12, %s567_s12, %s568_s13  }
  0x25   : > { %p104_p11 = scmp.lt.s32.totalorder %s564_s9, 3  ;;  %p843_p13 = scmp.ge.s32.totalorder %s564_s9, 1 }
  0x27   : > { %p105_p3 = pnand %p843_p13, %p104_p11 }
  0x28   : > { %s110_s16 = sand.u32 (!%p105_p3), 1, %s556_s7  }
  0x29   : > { %108 = sbr.rel (%p105_p3) target bundleno = 259 (0x103), region = 24  ;;  %s448_s17 = sshll.u32 (!%p105_p3), %s110_s16, 6 }
  0x2a   : > { %s111_s18 = scalar_lea.sflag (!%p105_p3), [#allocation3], %s110_s16  ;;  %s667_s19 = scalar_lea.vmem (!%p105_p3), [#allocation2], %s448_s17 }
  0x30   : > { %547 = dma.done.wait (%p617_p7), %s111_s18, 1024  }
  0x31   : > { %549 = vsyncadd (%p617_p7), %s111_s18, 4294966272  ;;  %v144_v0 = vld [vmem:[%s667_s19 + $0x10] sm:$0xff]  ;;  %v142_v1 = vld [vmem:[%s667_s19] sm:$0xff]  ;;  %s569_s20 = smov 114   ;;  %s570_s15 = smov 2   ;;  %vm230_vm0 = vcmask 15360  }
  0x32   : > { %162 = vrot.lane.b32.xlu1 %v144_v0, %s569_s20  ;;  %158 = vrot.lane.b32.xlu0 %v142_v1, %s569_s20  ;;  %v145_v2 = vld [vmem:[%s667_s19 + $0x18] sm:$0xff]  ;;  %v143_v3 = vld [vmem:[%s667_s19 + $0x8] sm:$0xff]  ;;  %s571_s21 = smov 18   ;;  %s449_s22 = sshll.u32 %s439_s10, 2  ;;  %vm239_vm1 = vcmask 146432   ;;  %vm248_vm2 = vcmask 162816  }
  0x33   : > { %v147_v4 = vld [vmem:[%s667_s19 + $0x28] sm:$0xff]  ;;  %v146_v5 = vld [vmem:[%s667_s19 + $0x20] sm:$0xff]  ;;  %v149_v6 = vld [vmem:[%s667_s19 + $0x38] sm:$0xff]  ;;  %p136_p7 = scmp.lt.s32.totalorder %s449_s22, 7  ;;  %vm309_vm3 = vcmask 156672  }
  0x34   : > { %v148_v7 = vld [vmem:[%s667_s19 + $0x30] sm:$0xff]  ;;  %v257_v8 = vld [vmem:[%s667_s19 + $0xe] sm:$0x3]  ;;  %v314_v9 = vld [vmem:[%s667_s19] sm:$0x3] }
  0x35   : > { %v258_v10 = vld [vmem:[%s667_s19 + $0x1e] sm:$0x3]  ;;  %v315_v11 = vld [vmem:[%s667_s19 + $0x10] sm:$0x3]  ;;  %v259_v12 = vld [vmem:[%s667_s19 + $0x2e] sm:$0x3] }
  0x36   : > { %164 = vrot.lane.b32.xlu1 %v145_v2, %s569_s20  ;;  %160 = vrot.lane.b32.xlu0 %v143_v3, %s569_s20  ;;  %v316_v13 = vld [vmem:[%s667_s19 + $0x20] sm:$0x3]  ;;  %v260_v14 = vld [vmem:[%s667_s19 + $0x3e] sm:$0x3]  ;;  %s849_s22 = smov (!%p136_p7, %s449_s22), 7 }
  0x37   : > { %v317_v15 = vld [vmem:[%s667_s19 + $0x30] sm:$0x3]  ;;  %s455_s23 = smul.u32 24, %s849_s22 }
  0x39   : > { %s754_s26 = scalar_lea.vmem %s840_s1, %s455_s23 }
  0x3a   : > { %168 = vrot.lane.b32.xlu1 %v147_v4, %s569_s20  ;;  %166 = vrot.lane.b32.xlu0 %v146_v5, %s569_s20 }
  0x3e   : > { %172 = vrot.lane.b32.xlu1 %v149_v6, %s569_s20  ;;  %170 = vrot.lane.b32.xlu0 %v148_v7, %s569_s20 }
  0x42   : > { %184 = vrot.lane.b32.xlu1 %v143_v3, %s570_s15  ;;  %182 = vrot.lane.b32.xlu0 %v142_v1, %s570_s15 }
  0x46   : > { %188 = vrot.lane.b32.xlu1 %v145_v2, %s570_s15  ;;  %186 = vrot.lane.b32.xlu0 %v144_v0, %s570_s15 }
  0x4a   : > { %192 = vrot.lane.b32.xlu1 %v147_v4, %s570_s15  ;;  %190 = vrot.lane.b32.xlu0 %v146_v5, %s570_s15 }
  0x4e   : > { %196 = vrot.lane.b32.xlu1 %v149_v6, %s570_s15  ;;  %194 = vrot.lane.b32.xlu0 %v148_v7, %s570_s15 }
  0x52   : > { %265 = vrot.lane.b32.xlu1 %v257_v8, %s569_s20  ;;  %206 = vrot.lane.b32.xlu0 %v142_v1, %s571_s21 }
  0x56   : > { %322 = vrot.lane.b32.xlu1 %v314_v9, %s569_s20  ;;  %277 = vrot.lane.b32.xlu0 %v257_v8, %s570_s15 }
  0x5a   : > { %208 = vrot.lane.b32.xlu1 %v143_v3, %s571_s21  ;;  %334 = vrot.lane.b32.xlu0 %v314_v9, %s570_s15 }
  0x5e   : > { %279 = vrot.lane.b32.xlu1 %v258_v10, %s570_s15  ;;  %267 = vrot.lane.b32.xlu0 %v258_v10, %s569_s20 }
  0x62   : > { %324 = vrot.lane.b32.xlu1 %v315_v11, %s569_s20  ;;  %289 = vrot.lane.b32.xlu0 %v257_v8, %s571_s21 }
  0x66   : > { %346 = vrot.lane.b32.xlu1 %v314_v9, %s571_s21  ;;  %336 = vrot.lane.b32.xlu0 %v315_v11, %s570_s15 }
  0x6a   : > { %212 = vrot.lane.b32.xlu1 %v145_v2, %s571_s21  ;;  %210 = vrot.lane.b32.xlu0 %v144_v0, %s571_s21 }
  0x6e   : > { %281 = vrot.lane.b32.xlu1 %v259_v12, %s570_s15  ;;  %269 = vrot.lane.b32.xlu0 %v259_v12, %s569_s20 }
  0x72   : > { %326 = vrot.lane.b32.xlu1 %v316_v13, %s569_s20  ;;  %291 = vrot.lane.b32.xlu0 %v258_v10, %s571_s21 }
  0x76   : > { %348 = vrot.lane.b32.xlu1 %v315_v11, %s571_s21  ;;  %338 = vrot.lane.b32.xlu0 %v316_v13, %s570_s15 }
  0x7a   : > { %216 = vrot.lane.b32.xlu1 %v147_v4, %s571_s21  ;;  %214 = vrot.lane.b32.xlu0 %v146_v5, %s571_s21 }
  0x7e   : > { %283 = vrot.lane.b32.xlu1 %v260_v14, %s570_s15  ;;  %271 = vrot.lane.b32.xlu0 %v260_v14, %s569_s20 }
  0x82   : > { %328 = vrot.lane.b32.xlu1 %v317_v15, %s569_s20  ;;  %293 = vrot.lane.b32.xlu0 %v259_v12, %s571_s21 }
  0x86   : > { %350 = vrot.lane.b32.xlu1 %v316_v13, %s571_s21  ;;  %340 = vrot.lane.b32.xlu0 %v317_v15, %s570_s15 }
  0x8a   : > { %220 = vrot.lane.b32.xlu1 %v149_v6, %s571_s21  ;;  %218 = vrot.lane.b32.xlu0 %v148_v7, %s571_s21 }
  0x8e   : > { %352 = vrot.lane.b32.xlu1 %v317_v15, %s571_s21  ;;  %295 = vrot.lane.b32.xlu0 %v260_v14, %s571_s21 }
  0xa4   : > { %v163_v16 = vpop.permute.xlu1 %162  ;;  %v159_v17 = vpop.permute.xlu0 %158 }
  0xa8   : > { %v165_v18 = vpop.permute.xlu1 %164  ;;  %v161_v19 = vpop.permute.xlu0 %160 }
  0xac   : > { %v737_v20 = vpop.permute.xlu1 %168  ;;  %v739_v21 = vpop.permute.xlu0 %166 }
  0xb0   : > { %v741_v22 = vpop.permute.xlu1 %172  ;;  %v743_v23 = vpop.permute.xlu0 %170 }
  0xb4   : > { %v185_v24 = vpop.permute.xlu1 %184  ;;  %v183_v25 = vpop.permute.xlu0 %182 }
  0xb5   : > { %v231_v32 = vsel %vm230_vm0, %v159_v17, %v183_v25  ;;  %v232_v38 = vsel %vm230_vm0, %v161_v19, %v185_v24 }
  0xb8   : > { %v189_v26 = vpop.permute.xlu1 %188  ;;  %v187_v27 = vpop.permute.xlu0 %186 }
  0xb9   : > { %v234_v52 = vsel %vm230_vm0, %v165_v18, %v189_v26  ;;  %v233_v53 = vsel %vm230_vm0, %v163_v16, %v187_v27 }
  0xbc   : > { %v193_v28 = vpop.permute.xlu1 %192  ;;  %v191_v29 = vpop.permute.xlu0 %190 }
  0xbd   : > { %v236_v4 = vsel %vm230_vm0, %v737_v20, %v193_v28  ;;  %v235_v5 = vsel %vm230_vm0, %v739_v21, %v191_v29 }
  0xc0   : > { %v747_v30 = vpop.permute.xlu1 %196  ;;  %v749_v31 = vpop.permute.xlu0 %194 }
  0xc1   : > { %v238_v20 = vsel %vm230_vm0, %v741_v22, %v747_v30  ;;  %v237_v21 = vsel %vm230_vm0, %v743_v23, %v749_v31 }
  0xc4   : > { %v266_v33 = vpop.permute.xlu1 %265  ;;  %v207_v34 = vpop.permute.xlu0 %206 }
  0xc5   : > { %v240_v35 = vsel %vm239_vm1, %v231_v32, %v207_v34 }
  0xc6   : > { %249 = vst.msk [vmem:[%s754_s26 + $0x2] sm:$0xff] %vm248_vm2, %v240_v35 }
  0xc8   : > { %v323_v36 = vpop.permute.xlu1 %322  ;;  %v278_v37 = vpop.permute.xlu0 %277 }
  0xc9   : > { %v301_v44 = vsel %vm230_vm0, %v266_v33, %v278_v37 }
  0xcc   : > { %v209_v39 = vpop.permute.xlu1 %208  ;;  %v335_v40 = vpop.permute.xlu0 %334 }
  0xcd   : > { %v241_v41 = vsel %vm239_vm1, %v232_v38, %v209_v39  ;;  %v358_v48 = vsel %vm230_vm0, %v323_v36, %v335_v40 }
  0xce   : > { %250 = vst.msk [vmem:[%s754_s26 + $0xa] sm:$0xff] %vm248_vm2, %v241_v41 }
  0xd0   : > { %v280_v42 = vpop.permute.xlu1 %279  ;;  %v268_v43 = vpop.permute.xlu0 %267 }
  0xd1   : > { %v302_v60 = vsel %vm230_vm0, %v268_v43, %v280_v42 }
  0xd4   : > { %v325_v45 = vpop.permute.xlu1 %324  ;;  %v290_v46 = vpop.permute.xlu0 %289 }
  0xd5   : > { %v305_v47 = vsel %vm239_vm1, %v301_v44, %v290_v46 }
  0xd6   : > { %310 = vst.msk [vmem:[%s754_s26] sm:$0x3] %vm309_vm3, %v305_v47 }
  0xd8   : > { %v347_v49 = vpop.permute.xlu1 %346  ;;  %v337_v50 = vpop.permute.xlu0 %336 }
  0xd9   : > { %v362_v51 = vsel %vm239_vm1, %v358_v48, %v347_v49  ;;  %v359_v0 = vsel %vm230_vm0, %v325_v45, %v337_v50 }
  0xda   : > { %366 = vst.msk [vmem:[%s754_s26 + $0x12] sm:$0x3] %vm309_vm3, %v362_v51 }
  0xdc   : > { %v213_v54 = vpop.permute.xlu1 %212  ;;  %v211_v55 = vpop.permute.xlu0 %210 }
  0xdd   : > { %v243_v56 = vsel %vm239_vm1, %v234_v52, %v213_v54  ;;  %v242_v57 = vsel %vm239_vm1, %v233_v53, %v211_v55 }
  0xde   : > { %252 = vst.msk [vmem:[%s754_s26 + $0x22] sm:$0xff] %vm248_vm2, %v243_v56  ;;  %251 = vst.msk [vmem:[%s754_s26 + $0x1a] sm:$0xff] %vm248_vm2, %v242_v57 }
  0xe0   : > { %v282_v58 = vpop.permute.xlu1 %281  ;;  %v270_v59 = vpop.permute.xlu0 %269 }
  0xe1   : > { %v303_v12 = vsel %vm230_vm0, %v270_v59, %v282_v58 }
  0xe4   : > { %v327_v61 = vpop.permute.xlu1 %326  ;;  %v292_v62 = vpop.permute.xlu0 %291 }
  0xe5   : > { %v306_v63 = vsel %vm239_vm1, %v302_v60, %v292_v62 }
  0xe6   : > { %311 = vst.msk [vmem:[%s754_s26 + $0x18] sm:$0x3] %vm309_vm3, %v306_v63 }
  0xe8   : > { %v349_v1 = vpop.permute.xlu1 %348  ;;  %v339_v2 = vpop.permute.xlu0 %338 }
  0xe9   : > { %v363_v3 = vsel %vm239_vm1, %v359_v0, %v349_v1  ;;  %v360_v16 = vsel %vm230_vm0, %v327_v61, %v339_v2 }
  0xea   : > { %367 = vst.msk [vmem:[%s754_s26 + $0x2a] sm:$0x3] %vm309_vm3, %v363_v3 }
  0xec   : > { %v217_v6 = vpop.permute.xlu1 %216  ;;  %v215_v7 = vpop.permute.xlu0 %214 }
  0xed   : > { %v245_v8 = vsel %vm239_vm1, %v236_v4, %v217_v6  ;;  %v244_v9 = vsel %vm239_vm1, %v235_v5, %v215_v7 }
  0xee   : > { %254 = vst.msk [vmem:[%s754_s26 + $0x3a] sm:$0xff] %vm248_vm2, %v245_v8  ;;  %253 = vst.msk [vmem:[%s754_s26 + $0x32] sm:$0xff] %vm248_vm2, %v244_v9 }
  0xf0   : > { %v284_v10 = vpop.permute.xlu1 %283  ;;  %v272_v11 = vpop.permute.xlu0 %271 }
  0xf1   : > { %v304_v28 = vsel %vm230_vm0, %v272_v11, %v284_v10 }
  0xf4   : > { %v329_v13 = vpop.permute.xlu1 %328  ;;  %v294_v14 = vpop.permute.xlu0 %293 }
  0xf5   : > { %v307_v15 = vsel %vm239_vm1, %v303_v12, %v294_v14 }
  0xf6   : > { %312 = vst.msk [vmem:[%s754_s26 + $0x30] sm:$0x3] %vm309_vm3, %v307_v15 }
  0xf8   : > { %v351_v17 = vpop.permute.xlu1 %350  ;;  %v341_v18 = vpop.permute.xlu0 %340 }
  0xf9   : > { %v364_v19 = vsel %vm239_vm1, %v360_v16, %v351_v17  ;;  %v361_v29 = vsel %vm230_vm0, %v329_v13, %v341_v18 }
  0xfa   : > { %368 = vst.msk [vmem:[%s754_s26 + $0x42] sm:$0x3] %vm309_vm3, %v364_v19 }
  0xfc   : > { %v221_v24 = vpop.permute.xlu1 %220  ;;  %v219_v25 = vpop.permute.xlu0 %218 }
  0xfd   : > { %v247_v26 = vsel %vm239_vm1, %v238_v20, %v221_v24  ;;  %v246_v27 = vsel %vm239_vm1, %v237_v21, %v219_v25 }
  0xfe   : > { %256 = vst.msk [vmem:[%s754_s26 + $0x52] sm:$0xff] %vm248_vm2, %v247_v26  ;;  %255 = vst.msk [vmem:[%s754_s26 + $0x4a] sm:$0xff] %vm248_vm2, %v246_v27 }
 0x100   : > { %v353_v32 = vpop.permute.xlu1 %352  ;;  %v296_v22 = vpop.permute.xlu0 %295 }
 0x101   : > { %v365_v30 = vsel %vm239_vm1, %v361_v29, %v353_v32  ;;  %v308_v23 = vsel %vm239_vm1, %v304_v28, %v296_v22 }
 0x102   : > { %369 = vst.msk [vmem:[%s754_s26 + $0x5a] sm:$0x3] %vm309_vm3, %v365_v30  ;;  %313 = vst.msk [vmem:[%s754_s26 + $0x48] sm:$0x3] %vm309_vm3, %v308_v23 }
 0x103 PF: > { %p11_p8 = scmp.ge.s32.totalorder %s602_s11, 4   ;;  %s844_s6 = smov %s556_s7 }
 0x104   : > { %s845_s7 = smov %s560_s8  ;;  %s846_s8 = smov %s612_s14 }
 0x105   : > { %s847_s9 = smov %s602_s11  ;;  %13 = sbr.rel (!%p11_p8) target bundleno = 3 (0x3), region = 64 }
 0x10c   :  { %394 = vsyncpa [#allocation3], 1 }
 0x10d   :  { %396 = vsyncpa [#allocation3 + $0x1], 1 }

</bundles_post_ra>
